<compile_context>
chip_gen: v7x
topology: tpu7x:2x2x1
jax: 0.10.0
libtpu: 0.0.40
codegen_flags: <defaults>
</compile_context>

<pallas_src>
import jax
import jax.numpy as jnp
from jax.experimental import pallas as pl
from jax.experimental.pallas import tpu as pltpu


# ---------------------------------------------------------------------------
# Kernels
# ---------------------------------------------------------------------------
def _se_fused_kernel(x_ref, w1t_ref, w2t_ref, o_ref):
    """Fused squeeze + excite + scale for a (Bt, C, HW) block."""
    x = x_ref[...]                                    # (Bt, C, HW), native dtype
    bt, _, hw = x.shape

    # --- squeeze: spatial mean with f32 accumulation on the MXU (no f32 copy
    #     of the activation slab). ---
    ones = jnp.ones((bt, hw, 1), dtype=x.dtype)
    sums = jnp.einsum("bch,bho->bco", x, ones,
                      preferred_element_type=jnp.float32)          # (Bt, C, 1)
    y = sums[..., 0] * jnp.float32(1.0 / hw)                       # (Bt, C) f32

    # --- excite: FC1 -> ReLU -> FC2 -> Sigmoid. Weights stay in native dtype
    #     (only the tiny (Bt, C) stats are cast), f32 accumulation. ---
    h = jnp.dot(y.astype(w1t_ref.dtype), w1t_ref[...],
                preferred_element_type=jnp.float32)                # (Bt, C//r)
    h = jnp.maximum(h, 0.0)
    s = jnp.dot(h.astype(w2t_ref.dtype), w2t_ref[...],
                preferred_element_type=jnp.float32)                # (Bt, C)
    s = jax.nn.sigmoid(s)

    # --- scale: channel-wise rescale in the input dtype. ---
    o_ref[...] = x * s[:, :, None].astype(x.dtype)


def _se_mean_kernel(x_ref, m_ref):
    """Phase 1 of the fallback: per-(b, c) spatial mean for a (1, Ct, HW) tile."""
    x = x_ref[...]                                    # (1, Ct, HW)
    hw = x.shape[-1]
    ones = jnp.ones((1, hw, 1), dtype=x.dtype)
    sums = jnp.einsum("bch,bho->bco", x, ones,
                      preferred_element_type=jnp.float32)          # (1, Ct, 1)
    m_ref[...] = sums * jnp.float32(1.0 / hw)


def _se_scale_kernel(x_ref, s_ref, o_ref):
    """Phase 2 of the fallback: channel-wise scale of a (1, Ct, HW) tile."""
    x = x_ref[...]                                    # (1, Ct, HW)
    o_ref[...] = x * s_ref[...].astype(x.dtype)       # s_ref: (1, Ct, 1)


# ---------------------------------------------------------------------------
# Tiling / budget helpers
# ---------------------------------------------------------------------------
def _vmem_budget_bytes() -> int:
    """Usable scoped-VMEM budget: physical capacity minus ~16 MiB headroom."""
    cap = 64 << 20  # conservative default = v7x per-TensorCore VMEM
    try:
        cap = int(getattr(pltpu.get_tpu_info(), "vmem_capacity_bytes", cap))
    except Exception:
        pass
    return max(cap - (16 << 20), 16 << 20)


def _pick_batch_tile(batch: int, per_batch_bytes: int,
                     target_bytes: int = 4 << 20) -> int:
    """Largest divisor of `batch` keeping the block <= ~4 MiB and the grid >= 2
    (and preferably even) so both TensorCores of a 2-TC chip stay busy."""
    if batch <= 1:
        return 1
    max_bt = max(1, min(batch // 2, target_bytes // max(per_batch_bytes, 1)))
    divs = [d for d in range(1, batch + 1) if batch % d == 0 and d <= max_bt]
    if not divs:
        return 1
    even = [d for d in divs if (batch // d) % 2 == 0]
    return max(even) if even else max(divs)


def _pick_channel_tile(C: int, HW: int, itemsize: int,
                       target_bytes: int = 2 << 20) -> int:
    """Channel tile for the two-phase path: multiple of 8 dividing C, ~<=2 MiB."""
    divs = [d for d in range(8, C + 1, 8) if C % d == 0]
    fit = [d for d in divs if d * HW * itemsize <= target_bytes]
    if fit:
        return max(fit)
    return min(divs) if divs else C


# ---------------------------------------------------------------------------
# Wrappers
# ---------------------------------------------------------------------------
def _se_two_phase(x3: jax.Array, w1: jax.Array, w2: jax.Array,
                  budget: int) -> jax.Array:
    """Fallback for slabs that do not fit VMEM: mean pass -> excite -> scale pass."""
    B, C, HW = x3.shape
    itemsize = x3.dtype.itemsize
    ct = _pick_channel_tile(C, HW, itemsize)
    grid = (B, C // ct)
    tile_bytes = ct * HW * itemsize

    # Phase 1: per-(b, c) spatial means (f32).
    mean_need = 2 * tile_bytes + 16 * ct * 4 + (2 << 20)
    means = pl.pallas_call(
        _se_mean_kernel,
        out_shape=jax.ShapeDtypeStruct((B, C, 1), jnp.float32),
        grid=grid,
        in_specs=[pl.BlockSpec((1, ct, HW), lambda b, c: (b, c, 0))],
        out_specs=pl.BlockSpec((1, ct, 1), lambda b, c: (b, c, 0)),
        compiler_params=pltpu.CompilerParams(
            dimension_semantics=("parallel", "parallel"),
            vmem_limit_bytes=int(min(max(mean_need, 16 << 20), budget)),
        ),
    )(x3)

    # Excite on the tiny (B, C) statistics in plain XLA (negligible cost).
    y = means[..., 0]                                               # (B, C) f32
    h = jnp.maximum(jnp.dot(y, w1.T.astype(jnp.float32)), 0.0)     # (B, C//r)
    s = jax.nn.sigmoid(jnp.dot(h, w2.T.astype(jnp.float32)))       # (B, C)
    s3 = s[..., None]                                               # (B, C, 1)

    # Phase 2: channel-wise scale.
    scale_need = 4 * tile_bytes + 16 * ct * 4 + (2 << 20)
    return pl.pallas_call(
        _se_scale_kernel,
        out_shape=jax.ShapeDtypeStruct((B, C, HW), x3.dtype),
        grid=grid,
        in_specs=[pl.BlockSpec((1, ct, HW), lambda b, c: (b, c, 0)),
                  pl.BlockSpec((1, ct, 1), lambda b, c: (b, c, 0))],
        out_specs=pl.BlockSpec((1, ct, HW), lambda b, c: (b, c, 0)),
        compiler_params=pltpu.CompilerParams(
            dimension_semantics=("parallel", "parallel"),
            vmem_limit_bytes=int(min(max(scale_need, 16 << 20), budget)),
        ),
    )(x3, s3)


def se_layer(x: jax.Array, w1: jax.Array, w2: jax.Array,
             *, force_two_phase: bool = False) -> jax.Array:
    """SELayer forward.

    x:  (B, C, H, W)
    w1: (C // reduction, C)   -- PyTorch fc[0].weight
    w2: (C, C // reduction)   -- PyTorch fc[2].weight
    """
    B, C, H, W = x.shape
    hidden = w1.shape[0]
    assert w1.shape == (hidden, C) and w2.shape == (C, hidden)
    HW = H * W
    itemsize = x.dtype.itemsize

    x3 = x.reshape(B, C, HW)  # contiguous reshape: no extra HBM pass

    budget = _vmem_budget_bytes()
    w_bytes = w1.size * w1.dtype.itemsize + w2.size * w2.dtype.itemsize

    per_b_bytes = C * HW * itemsize
    bt = _pick_batch_tile(B, per_b_bytes)
    block_bytes = bt * per_b_bytes
    # in + out blocks double-buffered, double-buffered weights, f32 statistics
    # (sums / y / h / s) and the ones-vector used by the MXU row-sum, + slack.
    fused_need = (4 * block_bytes + 2 * w_bytes
                  + 16 * bt * C * 4 + bt * HW * itemsize + (2 << 20))

    if force_two_phase or fused_need > budget:
        out3 = _se_two_phase(x3, w1, w2, budget)
    else:
        cost = pl.CostEstimate(
            flops=int(3 * B * C * HW + 4 * B * C * hidden),
            transcendentals=int(B * C),
            bytes_accessed=int(2 * B * C * HW * itemsize + w_bytes),
        )
        # Pre-transpose the tiny weights once so the in-kernel matmuls are in
        # canonical (M,K)@(K,N) orientation (dtype is untouched).
        w1t = w1.T  # (C, hidden)
        w2t = w2.T  # (hidden, C)
        out3 = pl.pallas_call(
            _se_fused_kernel,
            out_shape=jax.ShapeDtypeStruct((B, C, HW), x.dtype),
            grid=(B // bt,),
            in_specs=[
                pl.BlockSpec((bt, C, HW), lambda i: (i, 0, 0)),
                pl.BlockSpec((C, hidden), lambda i: (0, 0)),
                pl.BlockSpec((hidden, C), lambda i: (0, 0)),
            ],
            out_specs=pl.BlockSpec((bt, C, HW), lambda i: (i, 0, 0)),
            compiler_params=pltpu.CompilerParams(
                dimension_semantics=("parallel",),
                vmem_limit_bytes=int(min(max(fused_need, 16 << 20), budget)),
            ),
            cost_estimate=cost,
        )(x3, w1t, w2t)

    return out3.reshape(B, C, H, W)


def _se_ref(x, w1, w2):
    """Pure-JAX reference matching the PyTorch module."""
    y = jnp.mean(x.astype(jnp.float32), axis=(2, 3))       # (B, C)
    h = jnp.maximum(jnp.dot(y, w1.T.astype(jnp.float32)), 0.0)
    s = jax.nn.sigmoid(jnp.dot(h, w2.T.astype(jnp.float32)))
    return x * s[:, :, None, None].astype(x.dtype)


if __name__ == "__main__":
    key = jax.random.PRNGKey(0)
    kx, k1, k2 = jax.random.split(key, 3)

    # Small shapes consistent with the module: channel=64, reduction=8 -> hidden=8.
    B, C, H, W = 2, 64, 16, 16
    reduction = 8
    hidden = C // reduction

    x = jax.random.normal(kx, (B, C, H, W), dtype=jnp.float32) * 2.0
    w1 = jax.random.normal(k1, (hidden, C), dtype=jnp.float32) * (1.0 / C ** 0.5)
    w2 = jax.random.normal(k2, (C, hidden), dtype=jnp.float32) * (1.0 / hidden ** 0.5)

    y_ref = _se_ref(x, w1, w2)

    # Primary fused single-pass path.
    y = jax.block_until_ready(se_layer(x, w1, w2))
    assert y.shape == x.shape and y.dtype == x.dtype
    assert jnp.allclose(y, y_ref, atol=2e-3, rtol=2e-3), "fused path mismatch"

    # Also exercise the large-slab two-phase fallback on the same inputs.
    y2 = jax.block_until_ready(se_layer(x, w1, w2, force_two_phase=True))
    assert jnp.allclose(y2, y_ref, atol=2e-3, rtol=2e-3), "two-phase path mismatch"

    print("KERNEL_OK")
</pallas_src>

<mosaic_0001>
module attributes {stable_mosaic.version = 11 : i64} {
  func.func @_se_fused_kernel(%arg0: i32, %arg1: memref<1x64x256xf32, #tpu.memory_space<vmem>>, %arg2: memref<64x8xf32, #tpu.memory_space<vmem>>, %arg3: memref<8x64xf32, #tpu.memory_space<vmem>>, %arg4: memref<1x64x256xf32, #tpu.memory_space<vmem>>) attributes {dimension_semantics = [#tpu.dimension_semantics<parallel>], iteration_bounds = array<i64: 2>, scalar_prefetch = 0 : i64, scratch_operands = 0 : i64, tpu.core_type = #tpu.core_type<tc>, window_params = [{transform_indices = @transform_0, window_bounds = array<i64: 1, 64, 256>}, {pipeline_mode = #tpu.pipeline_mode<synchronous>, transform_indices = @transform_1, window_bounds = array<i64: 64, 8>}, {pipeline_mode = #tpu.pipeline_mode<synchronous>, transform_indices = @transform_2, window_bounds = array<i64: 8, 64>}, {transform_indices = @transform_3, window_bounds = array<i64: 1, 64, 256>}]} {
    %c0 = arith.constant 0 : index
    %c0_0 = arith.constant 0 : index
    %c0_1 = arith.constant 0 : index
    %0 = vector.load %arg1[%c0, %c0_0, %c0_1] : memref<1x64x256xf32, #tpu.memory_space<vmem>>, vector<1x64x256xf32>
    %cst = arith.constant 1.000000e+00 : f32
    %1 = vector.broadcast %cst : f32 to vector<1x256x1xf32>
    "tpu.trace_start"() <{level = 10 : i32, message = "bch,bho->bco"}> : () -> ()
    %cst_2 = arith.constant dense<0.000000e+00> : vector<1x64x1xf32>
    %2 = tpu.matmul %0, %1, %cst_2 {dimension_numbers = #tpu.dot_dimension_numbers<[2], [1], [1], [2], [0, 0, 0, 1, 1, 2], [0], [0]>} : vector<1x64x256xf32>, vector<1x256x1xf32>, vector<1x64x1xf32> -> vector<1x64x1xf32>
    "tpu.trace_stop"() : () -> ()
    %3 = vector.shape_cast %2 : vector<1x64x1xf32> to vector<1x64xf32>
    %cst_3 = arith.constant 3.906250e-03 : f32
    %4 = vector.broadcast %cst_3 : f32 to vector<1x64xf32>
    %5 = arith.mulf %3, %4 : vector<1x64xf32>
    %c0_4 = arith.constant 0 : index
    %c0_5 = arith.constant 0 : index
    %6 = vector.load %arg2[%c0_4, %c0_5] : memref<64x8xf32, #tpu.memory_space<vmem>>, vector<64x8xf32>
    %cst_6 = arith.constant dense<0.000000e+00> : vector<1x8xf32>
    %7 = tpu.matmul %5, %6, %cst_6 {dimension_numbers = #tpu.dot_dimension_numbers<[1], [0], [0], [1], [0, 0, 1, 1], [], []>} : vector<1x64xf32>, vector<64x8xf32>, vector<1x8xf32> -> vector<1x8xf32>
    %cst_7 = arith.constant 0.000000e+00 : f32
    %8 = vector.broadcast %cst_7 : f32 to vector<1x8xf32>
    %9 = arith.maximumf %7, %8 : vector<1x8xf32>
    %c0_8 = arith.constant 0 : index
    %c0_9 = arith.constant 0 : index
    %10 = vector.load %arg3[%c0_8, %c0_9] : memref<8x64xf32, #tpu.memory_space<vmem>>, vector<8x64xf32>
    %cst_10 = arith.constant dense<0.000000e+00> : vector<1x64xf32>
    %11 = tpu.matmul %9, %10, %cst_10 {dimension_numbers = #tpu.dot_dimension_numbers<[1], [0], [0], [1], [0, 0, 1, 1], [], []>} : vector<1x8xf32>, vector<8x64xf32>, vector<1x64xf32> -> vector<1x64xf32>
    %12 = arith.negf %11 : vector<1x64xf32>
    %13 = math.exp %12 : vector<1x64xf32>
    %cst_11 = arith.constant 1.000000e+00 : f32
    %14 = vector.broadcast %cst_11 : f32 to vector<1x64xf32>
    %15 = arith.addf %14, %13 : vector<1x64xf32>
    %16 = arith.divf %14, %15 : vector<1x64xf32>
    %17 = vector.shape_cast %16 : vector<1x64xf32> to vector<1x64x1xf32>
    %18 = vector.broadcast %17 : vector<1x64x1xf32> to vector<1x64x256xf32>
    %19 = arith.mulf %0, %18 : vector<1x64x256xf32>
    %c0_12 = arith.constant 0 : index
    %c0_13 = arith.constant 0 : index
    %c0_14 = arith.constant 0 : index
    %20 = vector.load %arg4[%c0_12, %c0_13, %c0_14] : memref<1x64x256xf32, #tpu.memory_space<vmem>>, vector<1x64x256xf32>
    tpu.vector_store %arg4[%c0_12, %c0_13, %c0_14], %19 {strides = array<i32>} : memref<1x64x256xf32, #tpu.memory_space<vmem>>, vector<1x64x256xf32>,
    return
  }
  func.func @transform_0(%arg0: i32) -> (i32, i32, i32) {
    %c0_i32 = arith.constant 0 : i32
    %c0_i32_0 = arith.constant 0 : i32
    %c0_i32_1 = arith.constant 0 : i32
    return %arg0, %c0_i32, %c0_i32_0 : i32, i32, i32
  }
  func.func @transform_1(%arg0: i32) -> (i32, i32) {
    %c0_i32 = arith.constant 0 : i32
    %c0_i32_0 = arith.constant 0 : i32
    %c0_i32_1 = arith.constant 0 : i32
    return %c0_i32, %c0_i32_0 : i32, i32
  }
  func.func @transform_2(%arg0: i32) -> (i32, i32) {
    %c0_i32 = arith.constant 0 : i32
    %c0_i32_0 = arith.constant 0 : i32
    %c0_i32_1 = arith.constant 0 : i32
    return %c0_i32, %c0_i32_0 : i32, i32
  }
  func.func @transform_3(%arg0: i32) -> (i32, i32, i32) {
    %c0_i32 = arith.constant 0 : i32
    %c0_i32_0 = arith.constant 0 : i32
    %c0_i32_1 = arith.constant 0 : i32
    return %arg0, %c0_i32, %c0_i32_0 : i32, i32, i32
  }
}

</mosaic_0001>

<bundles_post_ra>
// kernel: tpu_custom_call.1
= control target key start
LH: loop header
LB: loop body
LE: loop exit
PB: predicated region body
PF: predicated region fallthrough
CT: control target
= control target key end

     0   :  { %8 = vsyncpa [#allocation3], 0  ;;  %s1346_s0 = inlined_call_operand.hbm [shape: f32[2,64,256], index: 0, kind: input, shape index: {}]   ;;  %s1347_s1 = inlined_call_operand.vmem [shape: f32[64,8], index: 1, kind: input, shape index: {}]   ;;  %s1348_s2 = inlined_call_operand.vmem [shape: f32[8,64], index: 2, kind: input, shape index: {}]   ;;  %s1349_s3 = inlined_call_operand.hbm [shape: f32[2,64,256], index: 3, kind: output, shape index: {}]  }
   0x1   :  { %10 = vsyncpa [#allocation3 + $0x1], 0 }
   0x2   :  { %11 = vsyncpa [#allocation4], 0 }
   0x3   :  { %13 = vsyncpa [#allocation4 + $0x1], 0  ;;  %s1050_s12 = smov 0   ;;  %s1052_s13 = smov 0  }
   0x4   :  { %s1054_s14 = smov 0   ;;  %s1056_s15 = smov 0  }
   0x5 LB: > { %s1071_s16 = sadd.s32 4294967295, %s1017_s15   ;;  %s722_s17 = sadd.s32 4294967294, %s1017_s15   ;;  %s1017_s15 = sphi %s1056_s15, %s1362_s15   ;;  %s1013_s14 = sphi %s1054_s14, %s1361_s14   ;;  %s1009_s13 = sphi %s1052_s13, %s1360_s13   ;;  %s1005_s12 = sphi %s1050_s12, %s1359_s12  }
   0x6   : > { %s1075_s18 = sadd.s32 1, %s1017_s15   ;;  %s26_s19 = sadd.s32 1, %s1013_s14 }
   0x7   : > { %s23_s20 = ssub.s32 %s1017_s15, %s1075_s18  ;;  %p33_p0 = scmp.ne.s32.totalorder %s1013_s14, %s1009_s13 }
   0x8   : > { %p24_p1 = scmp.eq.s32.totalorder %s23_s20, 0  ;;  %p34_p2 = scmp.eq.s32.totalorder %s1017_s15, 0 }
   0x9   : > { %p39_p3 = scmp.ne.s32.totalorder %s1009_s13, %s1005_s12  ;;  %p40_p4 = scmp.eq.s32.totalorder %s1071_s16, 0 }
   0xa   : > { %s1087_s21 = scalar_select %p24_p1, %s1013_s14, %s26_s19  }
   0xb   : > { %p1089_p5 = por %p34_p2, %p33_p0  ;;  %p1093_p6 = por %p40_p4, %p39_p3 }
   0xc   : > { %p105_p7 = scmp.eq.s32.totalorder %s1071_s16, 1  ;;  %p111_p8 = scmp.eq.s32.totalorder %s722_s17, 1 }
   0xd   : > { %p872_p10 = scmp.lt.s32.totalorder %s1017_s15, 2  ;;  %s137_s26 = sand.u32 1, %s1013_s14  }
   0xe   : > { %p1100_p11 = por %p105_p7, %p33_p0  ;;  %p1104_p12 = por %p111_p8, %p39_p3 }
   0xf   : > { %s739_s27 = sshll.u32 %s1017_s15, 11  ;;  %s725_s28 = sshll.u32 %s137_s26, 7 }
  0x10   : > { %s1353_s24 = scalar_select %p1100_p11, 1, 0 }
  0x11   : > { %s1354_s25 = scalar_select %p1104_p12, 1, 0 }
  0x12   : > { %s1113_s4 = scalar_lea.hbm %s1346_s0, %s739_s27  ;;  %s141_s5 = scalar_lea.vmem [#allocation2], %s725_s28 }
  0x13   : > { %s148_s6 = sshll.u32 %s141_s5, 4  ;;  %p1117_p13 = pnand %p872_p10, %p1089_p5  ;;  %s1121_s6 = int_to_ptr.vmem [resolvable:$true] %s148_s6 }
  0x14   : > { %s1123_s8 = scalar_lea.sflag [#allocation3], %s137_s26  ;;  %s921_s9 = scalar_lea.hbm %s1113_s4, 2048 }
  0x15   : > { %p922_p0 = scmp.ne.s32.totalorder %s1113_s4, %s921_s9  ;;  %p923_p1 = pneg %p1117_p13 }
  0x16   : > { %s926_s17 = scalar_lea.hbm %s1346_s0, 4096  ;;  %p927_p4 = scmp.lt.u32.totalorder %s1113_s4, %s1346_s0 }
  0x17   : > { %p924_p2 = pnand %p923_p1, %p922_p0  ;;  %p928_p5 = scmp.lt.u32.totalorder %s926_s17, %s921_s9 }
  0x18   : > { %p930_p8 = scmp.lt.u32.totalorder %s921_s9, %s1113_s4 }
  0x19   : > { %p925_p3 = pneg %p924_p2  ;;  %p929_p7 = por %p928_p5, %p927_p4 }
  0x1b   : > { %p931_p10 = por %p930_p8, %p929_p7 }
  0x1d   : > { %p932_p9 = pnand %p931_p10, %p925_p3 }
  0x1f   : > { %935 = shalt.err (!%p932_p9)
}
  0x20   : > { %s936_s22 = scalar_lea.vmem %s1121_s6, 2048  ;;  %s1019_s26 = smov [#allocation2]  }
  0x21   : > { %p937_p0 = scmp.ne.s32.totalorder %s1121_s6, %s936_s22  ;;  %s941_s27 = sshll.u32 %s1019_s26, 4  ;;  %s942_s27 = int_to_ptr.vmem [resolvable:$false] %s941_s27 }
  0x22   : > { %s943_s28 = scalar_lea.vmem %s942_s27, 4096  ;;  %p944_p11 = scmp.lt.s32.totalorder %s1121_s6, %s942_s27 }
  0x23   : > { %p939_p2 = pnand %p937_p0, %p923_p1  ;;  %p945_p4 = scmp.lt.s32.totalorder %s943_s28, %s936_s22 }
  0x25   : > { %p940_p12 = pneg %p939_p2  ;;  %p946_p5 = por %p945_p4, %p944_p11 }
  0x27   : > { %p947_p7 = pnand %p946_p5, %p940_p12 }
  0x29   : > { %950 = shalt.err (!%p947_p7)
}
  0x2a   : > { %s1020_s29 = smov 256   ;;  %s1021_s30 = smov 16  }
  0x2b   : > { %867 = dma.hbm_to_vmem [thread:$0]  (!%p1117_p13), %s1113_s4, 2048, %s1121_s6, %s1123_s8, %s1020_s29, %s1020_s29, %s1021_s30  }
  0x2c   : > { %p728_p9 = scmp.ge.s32.totalorder %s1017_s15, 1  ;;  %p156_p1 = scmp.lt.s32.totalorder %s1017_s15, 3 }
  0x2e   : > { %p157_p3 = pnand %p728_p9, %p156_p1 }
  0x2f   : > { %s1154_s5 = sand.u32 (!%p157_p3), 1, %s1009_s13  }
  0x30   : > { %160 = sbr.rel (%p157_p3) target bundleno = 1064 (0x428), region = 32  ;;  %s729_s9 = sshll.u32 (!%p157_p3), %s1154_s5, 7 }
  0x31   : > { %s163_s10 = scalar_lea.sflag (!%p157_p3), [#allocation3], %s1154_s5  ;;  %s1160_s11 = scalar_lea.vmem (!%p157_p3), [#allocation2], %s729_s9 }
  0x37   : > { %996 = dma.done.wait (%p1093_p6), %s163_s10, 2048  }
  0x38   : > { %998 = vsyncadd (%p1093_p6), %s163_s10, 4294965248  ;;  %v1022_v0 = vmov 1.0|1.0   ;;  %v1167_v1 = vld [vmem:[%s1160_s11 + $0x8] sm:$0xff]  ;;  %v1171_v2 = vld [vmem:[%s1160_s11] sm:$0xff]  ;;  %v1023_v17 = vmov 0  }
  0x39   : > { %832 = vmatprep.subr.bf16.mxu0 %v1022_v0  ;;  %269 = vmatprep.mubr.f32.mxu0 %v1167_v1  ;;  %v1174_v3 = vld [vmem:[%s1160_s11 + $0x18] sm:$0xff]  ;;  %v1179_v4 = vld [vmem:[%s1160_s11 + $0x10] sm:$0xff]  ;;  %v1182_v5 = vld [vmem:[%s1160_s11 + $0x28] sm:$0xff]  ;;  %v1024_v42 = vmov 0.0|0.0   ;;  %vm1025_vm0 = vmmov 0   ;;  %v1026_v63 = vmov 0.0  }
  0x3a   : > { %833 = vmatpush3.bf16.msra.mxu0 %v1022_v0  ;;  %v1187_v6 = vld [vmem:[%s1160_s11 + $0x20] sm:$0xff]  ;;  %v1190_v7 = vld [vmem:[%s1160_s11 + $0x38] sm:$0xff]  ;;  %v1195_v8 = vld [vmem:[%s1160_s11 + $0x30] sm:$0xff]  ;;  %915 = vset.pattern.permute.xlu0 %v1023_v17  ;;  %vm369_vm1 = vcmask 130112   ;;  %vm376_vm2 = vcmask 195712   ;;  %vm383_vm3 = vcmask 261312  }
  0x3b   : > { %834 = vmatprep.subr.bf16.mxu0 %v1022_v0  ;;  %v1198_v9 = vld [vmem:[%s1160_s11 + $0x48] sm:$0xff]  ;;  %v1203_v10 = vld [vmem:[%s1160_s11 + $0x40] sm:$0xff]  ;;  %v1206_v11 = vld [vmem:[%s1160_s11 + $0x58] sm:$0xff]  ;;  %916 = vset.pattern.permute.xlu1 %v1023_v17  ;;  %vm390_vm4 = vcmask 326912   ;;  %vm397_vm5 = vcmask 392512   ;;  %vm404_vm6 = vcmask 458112  }
  0x3c   : > { %v1211_v12 = vld [vmem:[%s1160_s11 + $0x50] sm:$0xff]  ;;  %v1214_v13 = vld [vmem:[%s1160_s11 + $0x68] sm:$0xff]  ;;  %v1219_v14 = vld [vmem:[%s1160_s11 + $0x60] sm:$0xff]  ;;  %848 = vmatprep.subr.bf16.mxu1 %v1024_v42  ;;  %824 = vmatprep.mubr.msk.f32.mxu1 %vm1025_vm0, %v1026_v63  ;;  %vm411_vm7 = vcmask 523712   ;;  %vm413_vm8 = vcmask 523264   ;;  %vm488_vm9 = vcmask 64512  }
  0x3d   : > { %v1222_v15 = vld [vmem:[%s1160_s11 + $0x78] sm:$0xff]  ;;  %v1227_v16 = vld [vmem:[%s1160_s11 + $0x70] sm:$0xff]  ;;  %v318_v37 = vld [vmem:[%s1347_s1] sm:$0xff]  ;;  %s1265_s6 = scalar_lea.vmem [#allocation5], %s729_s9  ;;  %s740_s9 = sshll.u32 %s1071_s16, 11 }
  0x3e   : > { %835 = vmatpush3.bf16.msra.mxu0 %v1022_v0  ;;  %v319_v38 = vld [vmem:[%s1347_s1 + $0x8] sm:$0xff]  ;;  %v320_v45 = vld [vmem:[%s1347_s1 + $0x10] sm:$0xff]  ;;  %v321_v46 = vld [vmem:[%s1347_s1 + $0x18] sm:$0xff]  ;;  %s649_s7 = sshll.u32 %s1265_s6, 4  ;;  %s1292_s19 = scalar_lea.hbm %s1349_s3, %s740_s9  ;;  %s1294_s7 = int_to_ptr.vmem [resolvable:$true] %s649_s7 }
  0x3f   : > { %836 = vmatprep.subr.bf16.mxu0 %v1022_v0  ;;  %v849_v43 = vpack.c.bf16 %v319_v38, %v318_v37  ;;  %v852_v49 = vpack.c.bf16 %v321_v46, %v320_v45  ;;  %v322_v52 = vld [vmem:[%s1347_s1 + $0x20] sm:$0xff]  ;;  %v323_v53 = vld [vmem:[%s1347_s1 + $0x28] sm:$0xff]  ;;  %v324_v59 = vld [vmem:[%s1347_s1 + $0x30] sm:$0xff]  ;;  %s636_s16 = scalar_lea.sflag [#allocation4], %s1154_s5  ;;  %s951_s20 = scalar_lea.vmem %s1294_s7, 2048 }
  0x40   : > { %v855_v56 = vpack.c.bf16 %v323_v53, %v322_v52  ;;  %v325_v60 = vld [vmem:[%s1347_s1 + $0x38] sm:$0xff]  ;;  %p952_p6 = scmp.ne.s32.totalorder %s1294_s7, %s951_s20  ;;  %p1356_p11 = scmp.ne.s32.totalorder %s1353_s24, 0 }
  0x41   : > { %850 = vmatpush3.bf16.msra.mxu1 %v849_v43  ;;  %v858_v62 = vpack.c.bf16 %v325_v60, %v324_v59  ;;  %s1027_s22 = smov [#allocation5]  }
  0x42   : > { %837 = vmatpush3.bf16.msra.mxu0 %v1022_v0  ;;  %851 = vmatprep.subr.bf16.mxu1 %v1024_v42  ;;  %p953_p12 = pnand %p952_p6, %p1356_p11  ;;  %s955_s26 = sshll.u32 %s1027_s22, 4  ;;  %s956_s26 = int_to_ptr.vmem [resolvable:$false] %s955_s26 }
  0x43   : > { %838 = vmatprep.subr.bf16.mxu0 %v1022_v0  ;;  %s957_s27 = scalar_lea.vmem %s956_s26, 4096  ;;  %p958_p8 = scmp.lt.s32.totalorder %s1294_s7, %s956_s26 }
  0x44   : > { %p954_p13 = pneg %p953_p12  ;;  %p959_p10 = scmp.lt.s32.totalorder %s957_s27, %s951_s20 }
  0x45   : > { %853 = vmatpush3.bf16.msra.mxu1 %v852_v49 }
  0x46   : > { %839 = vmatpush3.bf16.msra.mxu0 %v1022_v0  ;;  %854 = vmatprep.subr.bf16.mxu1 %v1024_v42  ;;  %p960_p0 = por %p959_p10, %p958_p8 }
  0x47   : > { %840 = vmatprep.subr.bf16.mxu0 %v1022_v0 }
  0x48   : > { %p961_p2 = pnand %p960_p0, %p954_p13 }
  0x49   : > { %856 = vmatpush3.bf16.msra.mxu1 %v855_v56  ;;  %v487_v56 = vld [vmem:[%s1348_s2] sm:$0xff] }
  0x4a   : > { %841 = vmatpush3.bf16.msra.mxu0 %v1022_v0  ;;  %857 = vmatprep.subr.bf16.mxu1 %v1024_v42 }
  0x4b   : > { %842 = vmatprep.subr.bf16.mxu0 %v1022_v0 }
  0x4d   : > { %859 = vmatpush3.bf16.msra.mxu1 %v858_v62 }
  0x4e   : > { %843 = vmatpush3.bf16.msra.mxu0 %v1022_v0  ;;  %827 = vmatprep.subr.mxu1 %v1026_v63 }
  0x4f   : > { %844 = vmatprep.subr.bf16.mxu0 %v1022_v0 }
  0x52   : > { %845 = vmatpush3.bf16.msra.mxu0 %v1022_v0 }
  0x53   : > { %846 = vmatprep.subr.bf16.mxu0 %v1022_v0 }
  0x56   : > { %847 = vmatpush3.bf16.msra.mxu0 %v1022_v0  ;;  %v358_v0 = vlaneseq }
  0x59   : > { %270 = vmatmul.mubr.f32.vlgmr.msra.gmra.mrb[0].mxu0 %v1171_v2 }
  0x5a   : > { %274 = vmatprep.mubr.f32.mxu0 %v1174_v3 }
  0x5d   : > { %275 = vmatmul.mubr.f32.gmra.mrb[2].mxu0 %v1179_v4 }
  0x5e   : > { %279 = vmatprep.mubr.f32.mxu0 %v1182_v5 }
  0x61   : > { %280 = vmatmul.mubr.f32.gmra.mrb[4].mxu0 %v1187_v6 }
  0x62   : > { %284 = vmatprep.mubr.f32.mxu0 %v1190_v7 }
  0x65   : > { %285 = vmatmul.mubr.f32.gmra.mrb[6].mxu0 %v1195_v8 }
  0x66   : > { %289 = vmatprep.mubr.f32.mxu0 %v1198_v9 }
  0x69   : > { %290 = vmatmul.mubr.f32.gmra.mrb[8].mxu0 %v1203_v10 }
  0x6a   : > { %294 = vmatprep.mubr.f32.mxu0 %v1206_v11 }
  0x6d   : > { %295 = vmatmul.mubr.f32.gmra.mrb[10].mxu0 %v1211_v12 }
  0x6e   : > { %299 = vmatprep.mubr.f32.mxu0 %v1214_v13 }
  0x71   : > { %300 = vmatmul.mubr.f32.gmra.mrb[12].mxu0 %v1219_v14 }
  0x72   : > { %304 = vmatprep.mubr.f32.mxu0 %v1222_v15 }
  0x75   : > { %305 = vmatmul.mubr.f32.gmra.mrb[14].mxu0 %v1227_v16 }
 0x12c   : > { %v773_v18 = vpop.f32.mrb[0].mxu0 }
 0x12d   : > { %v774_v19 = vpop.f32.mrb[1].mxu0 }
 0x12e   : > { %v775_v20 = vadd.f32 %v774_v19, %v773_v18  ;;  %v359_v18 = vand.u32 127, %v358_v0 }
 0x130   : > { %v310_v21 = vmul.f32 0.00390625, %v775_v20  ;;  %v776_v22 = vpop.f32.mrb[2].mxu0  ;;  %v364_v20 = vadd.s32 4294967288, %v359_v18  ;;  %v406_v37 = vadd.s32 4294967240, %v359_v18 }
 0x131   : > { %v777_v23 = vpop.f32.mrb[3].mxu0 }
 0x132   : > { %v778_v24 = vadd.f32 %v777_v23, %v776_v22  ;;  %335 = vperm.xlu0 %915, %v310_v21   ;;  %v371_v21 = vadd.s32 4294967280, %v359_v18  ;;  %v361_v22 = vshrl.u32 %v358_v0, 7  ;;  %v378_v23 = vadd.s32 4294967272, %v359_v18 }
 0x134   : > { %v311_v25 = vmul.f32 0.00390625, %v778_v24  ;;  %v779_v26 = vpop.f32.mrb[4].mxu0 }
 0x135   : > { %v780_v27 = vpop.f32.mrb[5].mxu0 }
 0x136   : > { %v781_v28 = vadd.f32 %v780_v27, %v779_v26  ;;  %338 = vperm.xlu0 %915, %v311_v25   ;;  %v385_v25 = vadd.s32 4294967264, %v359_v18  ;;  %v367_v26 = vsub.s32 %v364_v20, %v361_v22  ;;  %v392_v27 = vadd.s32 4294967256, %v359_v18 }
 0x138   : > { %v312_v29 = vmul.f32 0.00390625, %v781_v28  ;;  %v782_v30 = vpop.f32.mrb[6].mxu0  ;;  %v374_v28 = vsub.s32 %v371_v21, %v361_v22 }
 0x139   : > { %v783_v31 = vpop.f32.mrb[7].mxu0 }
 0x13a   : > { %v784_v32 = vadd.f32 %v783_v31, %v782_v30  ;;  %341 = vperm.xlu1 %916, %v312_v29   ;;  %v399_v30 = vadd.s32 4294967248, %v359_v18  ;;  %v362_v31 = vsub.s32 %v359_v18, %v361_v22 }
 0x13c   : > { %v313_v33 = vmul.f32 0.00390625, %v784_v32  ;;  %v785_v34 = vpop.f32.mrb[8].mxu0  ;;  %v381_v32 = vsub.s32 %v378_v23, %v361_v22 }
 0x13d   : > { %v786_v35 = vpop.f32.mrb[9].mxu0 }
 0x13e   : > { %v787_v36 = vadd.f32 %v786_v35, %v785_v34  ;;  %344 = vperm.xlu1 %916, %v313_v33   ;;  %v388_v33 = vsub.s32 %v385_v25, %v361_v22 }
 0x140   : > { %v314_v39 = vmul.f32 0.00390625, %v787_v36  ;;  %v788_v40 = vpop.f32.mrb[10].mxu0  ;;  %v395_v36 = vsub.s32 %v392_v27, %v361_v22 }
 0x141   : > { %v789_v41 = vpop.f32.mrb[11].mxu0 }
 0x142   : > { %v790_v44 = vadd.f32 %v789_v41, %v788_v40  ;;  %347 = vperm.xlu0 %915, %v314_v39   ;;  %v402_v40 = vsub.s32 %v399_v30, %v361_v22 }
 0x144   : > { %v315_v47 = vmul.f32 0.00390625, %v790_v44  ;;  %v791_v48 = vpop.f32.mrb[12].mxu0 }
 0x145   : > { %v792_v50 = vpop.f32.mrb[13].mxu0 }
 0x146   : > { %v793_v51 = vadd.f32 %v792_v50, %v791_v48  ;;  %350 = vperm.xlu1 %916, %v315_v47   ;;  %v409_v47 = vsub.s32 %v406_v37, %v361_v22 }
 0x148   : > { %v316_v54 = vmul.f32 0.00390625, %v793_v51  ;;  %v794_v55 = vpop.f32.mrb[14].mxu0 }
 0x149   : > { %v795_v57 = vpop.f32.mrb[15].mxu0 }
 0x14a   : > { %v796_v58 = vadd.f32 %v795_v57, %v794_v55  ;;  %353 = vperm.xlu0 %915, %v316_v54  }
 0x14c   : > { %v317_v61 = vmul.f32 0.00390625, %v796_v58 }
 0x14e   : > { %356 = vperm.xlu1 %916, %v317_v61  }
 0x1b1   : > { %v336_v17 = vpop.permute.xlu0 %335 }
 0x1b2   : > { %v363_v41 = vrot.slane %v336_v17, %v362_v31 }
 0x1b5   : > { %v339_v24 = vpop.permute.xlu0 %338 }
 0x1b6   : > { %v368_v35 = vrot.slane %v339_v24, %v367_v26 }
 0x1b8   : > { %v370_v45 = vsel %vm369_vm1, %v368_v35, %v363_v41 }
 0x1b9   : > { %v342_v19 = vpop.permute.xlu1 %341 }
 0x1ba   : > { %v375_v38 = vrot.slane %v342_v19, %v374_v28  ;;  %v570_v19 = vsub.s32 0, %v361_v22 }
 0x1bc   : > { %v377_v48 = vsel %vm376_vm2, %v375_v38, %v370_v45 }
 0x1bd   : > { %v345_v29 = vpop.permute.xlu1 %344 }
 0x1be   : > { %v382_v42 = vrot.slane %v345_v29, %v381_v32 }
 0x1c0   : > { %v384_v50 = vsel %vm383_vm3, %v382_v42, %v377_v48 }
 0x1c1   : > { %v348_v34 = vpop.permute.xlu0 %347 }
 0x1c2   : > { %v389_v43 = vrot.slane %v348_v34, %v388_v33 }
 0x1c4   : > { %v391_v51 = vsel %vm390_vm4, %v389_v43, %v384_v50 }
 0x1c5   : > { %v351_v39 = vpop.permute.xlu1 %350 }
 0x1c6   : > { %v396_v46 = vrot.slane %v351_v39, %v395_v36 }
 0x1c8   : > { %v398_v53 = vsel %vm397_vm5, %v396_v46, %v391_v51 }
 0x1c9   : > { %v354_v44 = vpop.permute.xlu0 %353 }
 0x1ca   : > { %v403_v49 = vrot.slane %v354_v44, %v402_v40 }
 0x1cc   : > { %v405_v55 = vsel %vm404_vm6, %v403_v49, %v398_v53 }
 0x1cd   : > { %v357_v52 = vpop.permute.xlu1 %356 }
 0x1ce   : > { %v410_v54 = vrot.slane %v357_v52, %v409_v47 }
 0x1d0   : > { %v412_v57 = vsel %vm411_vm7, %v410_v54, %v405_v55 }
 0x1d1   : > { %825 = vmatmul.mubr.msk.f32.vlgmr.msra.gmra.mrb[0].mxu1 %vm413_vm8, %v412_v57 }
 0x1d2   : > { %828 = vmatpush3.msra.mxu1 %v487_v56  ;;  %829 = vmatprep.mubr.msk.f32.mxu1 %vm1025_vm0, %v1026_v63 }
 0x2a4   : > { %v482_v58 = vpop.f32.mrb[0].mxu1 }
 0x2a5   : > { %v486_v59 = vmax.f32 %v482_v58, 0.0  ;;  %v826_v60 = vpop.f32.mrb[1].mxu1 }
 0x2a7   : > { %830 = vmatmul.mubr.msk.f32.vlgmr.msra.gmra.mrb[2].mxu1 %vm488_vm9, %v486_v59 }
 0x37a   : > { %v558_v61 = vpop.f32.mrb[2].mxu1 }
 0x37b   : > { %v733_v62 = vmul.f32 -1.442695, %v558_v61  ;;  %v831_v0 = vpop.f32.mrb[3].mxu1 }
 0x37d   : > { %917 = vpow2.f32 %v733_v62 }
 0x387   : > { %v918_v17 = vpop.eup %917 }
 0x388   : > { %v565_v18 = vadd.f32 1.0, %v918_v17 }
 0x38a   : > { %919 = vrcp.f32 %v565_v18 }
 0x394   : > { %v920_v20 = vpop.eup %919 }
 0x395   : > { %v571_v21 = vrot.slane %v920_v20, %v570_v19 }
 0x397   : > { %577 = vbcast.lane.b32.xlu1 %v571_v21, 264  ;;  %573 = vbcast.lane.b32.xlu0 %v571_v21, 256 }
 0x39b   : > { %585 = vbcast.lane.b32.xlu1 %v571_v21, 280  ;;  %581 = vbcast.lane.b32.xlu0 %v571_v21, 272 }
 0x39f   : > { %593 = vbcast.lane.b32.xlu1 %v571_v21, 296  ;;  %589 = vbcast.lane.b32.xlu0 %v571_v21, 288 }
 0x3a3   : > { %601 = vbcast.lane.b32.xlu1 %v571_v21, 312  ;;  %597 = vbcast.lane.b32.xlu0 %v571_v21, 304 }
 0x409   : > { %v578_v63 = vpop.permute.xlu1 %577  ;;  %v574_v23 = vpop.permute.xlu0 %573 }
 0x40a   : > { %v605_v24 = vmul.f32 %v578_v63, %v1179_v4  ;;  %v606_v25 = vmul.f32 %v578_v63, %v1174_v3  ;;  %v603_v26 = vmul.f32 %v574_v23, %v1171_v2  ;;  %v604_v22 = vmul.f32 %v574_v23, %v1167_v1 }
 0x40c   : > { %621 = vst [vmem:[%s1265_s6 + $0x10] sm:$0xff] %v605_v24  ;;  %622 = vst [vmem:[%s1265_s6 + $0x18] sm:$0xff] %v606_v25 }
 0x40d   : > { %619 = vst [vmem:[%s1265_s6] sm:$0xff] %v603_v26  ;;  %620 = vst [vmem:[%s1265_s6 + $0x8] sm:$0xff] %v604_v22  ;;  %v586_v3 = vpop.permute.xlu1 %585  ;;  %v582_v2 = vpop.permute.xlu0 %581 }
 0x40e   : > { %v609_v1 = vmul.f32 %v586_v3, %v1195_v8  ;;  %v610_v4 = vmul.f32 %v586_v3, %v1190_v7  ;;  %v607_v27 = vmul.f32 %v582_v2, %v1187_v6  ;;  %v608_v28 = vmul.f32 %v582_v2, %v1182_v5 }
 0x410   : > { %625 = vst [vmem:[%s1265_s6 + $0x30] sm:$0xff] %v609_v1  ;;  %626 = vst [vmem:[%s1265_s6 + $0x38] sm:$0xff] %v610_v4 }
 0x411   : > { %623 = vst [vmem:[%s1265_s6 + $0x20] sm:$0xff] %v607_v27  ;;  %624 = vst [vmem:[%s1265_s6 + $0x28] sm:$0xff] %v608_v28  ;;  %v594_v29 = vpop.permute.xlu1 %593  ;;  %v590_v30 = vpop.permute.xlu0 %589 }
 0x412   : > { %v613_v31 = vmul.f32 %v594_v29, %v1211_v12  ;;  %v614_v8 = vmul.f32 %v594_v29, %v1206_v11  ;;  %v611_v32 = vmul.f32 %v590_v30, %v1203_v10  ;;  %v612_v7 = vmul.f32 %v590_v30, %v1198_v9 }
 0x414   : > { %629 = vst [vmem:[%s1265_s6 + $0x50] sm:$0xff] %v613_v31  ;;  %630 = vst [vmem:[%s1265_s6 + $0x58] sm:$0xff] %v614_v8 }
 0x415   : > { %627 = vst [vmem:[%s1265_s6 + $0x40] sm:$0xff] %v611_v32  ;;  %628 = vst [vmem:[%s1265_s6 + $0x48] sm:$0xff] %v612_v7  ;;  %v602_v5 = vpop.permute.xlu1 %601  ;;  %v598_v6 = vpop.permute.xlu0 %597 }
 0x416   : > { %v617_v9 = vmul.f32 %v602_v5, %v1227_v16  ;;  %v618_v10 = vmul.f32 %v602_v5, %v1222_v15  ;;  %v615_v11 = vmul.f32 %v598_v6, %v1219_v14  ;;  %v616_v12 = vmul.f32 %v598_v6, %v1214_v13 }
 0x418   : > { %633 = vst [vmem:[%s1265_s6 + $0x70] sm:$0xff] %v617_v9  ;;  %634 = vst [vmem:[%s1265_s6 + $0x78] sm:$0xff] %v618_v10 }
 0x419   : > { %631 = vst [vmem:[%s1265_s6 + $0x60] sm:$0xff] %v615_v11  ;;  %632 = vst [vmem:[%s1265_s6 + $0x68] sm:$0xff] %v616_v12 }
 0x41a   : > { %964 = shalt.err (!%p961_p2)
}
 0x41b   : > { %s965_s28 = scalar_lea.hbm %s1292_s19, 2048  ;;  %s969_s10 = scalar_lea.hbm %s1349_s3, 4096 }
 0x41c   : > { %p966_p4 = scmp.ne.s32.totalorder %s1292_s19, %s965_s28  ;;  %p970_p9 = scmp.lt.u32.totalorder %s1292_s19, %s1349_s3 }
 0x41d   : > { %p971_p1 = scmp.lt.u32.totalorder %s969_s10, %s965_s28  ;;  %p973_p6 = scmp.lt.u32.totalorder %s965_s28, %s1292_s19 }
 0x41e   : > { %p967_p5 = pnand %p966_p4, %p1356_p11 }
 0x41f   : > { %p972_p3 = por %p971_p1, %p970_p9 }
 0x420   : > { %p968_p7 = pneg %p967_p5 }
 0x421   : > { %p974_p12 = por %p973_p6, %p972_p3 }
 0x423   : > { %p975_p13 = pnand %p974_p12, %p968_p7 }
 0x425   : > { %978 = shalt.err (!%p975_p13)
}
 0x426   : > { %s1028_s4 = smov 256   ;;  %s1029_s6 = smov 16  }
 0x427   : > { %862 = dma.vmem_to_hbm [thread:$0]  (%p1356_p11), %s1294_s7, 2048, %s1292_s19, %s636_s16, %s1028_s4, %s1028_s4, %s1029_s6  }
 0x428 PF: > { %s664_s9 = sand.u32 1, %s1005_s12   ;;  %p1357_p8 = scmp.ne.s32.totalorder %s1354_s25, 0 }
 0x429   : > { %p1358_p10 = scmp.ge.s32.totalorder %s1017_s15, 2  ;;  %s665_s8 = scalar_lea.sflag [#allocation4], %s664_s9 }
 0x42b   : > { %p869_p0 = pnand %p1358_p10, %p1357_p8 }
 0x42d   : > { %1000 = dma.done.wait (!%p869_p0), %s665_s8, 2048  }
 0x42e   : > { %1002 = vsyncadd (!%p869_p0), %s665_s8, 4294965248  ;;  %p16_p2 = scmp.ge.s32.totalorder %s1075_s18, 4   ;;  %s1359_s12 = smov %s1009_s13 }
 0x42f   : > { %s1360_s13 = smov %s1013_s14  ;;  %s1361_s14 = smov %s1087_s21 }
 0x430   : > { %s1362_s15 = smov %s1075_s18  ;;  %18 = sbr.rel (!%p16_p2) target bundleno = 5 (0x5), region = 77 }
 0x437   :  { %670 = vsyncpa [#allocation3], 1 }
 0x438   :  { %672 = vsyncpa [#allocation3 + $0x1], 1 }
 0x439   :  { %673 = vsyncpa [#allocation4], 1 }
 0x43a   :  { %675 = vsyncpa [#allocation4 + $0x1], 1 }

</bundles_post_ra>
